<compile_context>
chip_gen: v7x
topology: tpu7x:2x2x1
jax: 0.10.0
libtpu: 0.0.40
codegen_flags: <defaults>
</compile_context>

<pallas_src>
import functools
import math

import jax
import jax.numpy as jnp
import numpy as np
from jax.experimental import pallas as pl

HIDDEN = 32
NUM_HEADS = 4
HEAD_DIM = HIDDEN // NUM_HEADS
LN_EPS = 1e-5


def _layernorm(x, gamma, beta):
    mu = jnp.mean(x, axis=-1, keepdims=True)
    var = jnp.mean((x - mu) ** 2, axis=-1, keepdims=True)
    return (x - mu) * jax.lax.rsqrt(var + LN_EPS) * gamma + beta


def transformer_block_kernel(x_ref, wqkv_ref, wo_ref, w1_ref, w2_ref, vec_ref,
                             o_ref, *, batch, seq):
    E, D, H = HIDDEN, HEAD_DIM, NUM_HEADS
    BS = batch * seq

    vec = vec_ref[...]            # (8, 4E) packed biases / LayerNorm params
    x = x_ref[...]                # (3*BS, E): [Q; K; V] rows stacked

    # --- fused QKV projection: one (3BS, E) x (E, 3E) MXU pass ---
    # Wq columns (and bq) are pre-scaled by 1/sqrt(head_dim) host-side.
    # Adding the concatenated bias row to the whole result biases the three diagonal
    # blocks correctly; off-diagonal blocks are never read.
    qkv = jnp.dot(x, wqkv_ref[...], preferred_element_type=jnp.float32)   # (3BS, 3E)
    qkv = qkv + vec[0, 0:3 * E]

    # --- one relayout per tensor: gather per-head lane slices into a head-major
    #     (H*B, S, D) batch layout for fully batched attention ---
    def heads(row0, col0):
        return jnp.concatenate(
            [qkv[row0:row0 + BS, col0 + h * D:col0 + (h + 1) * D] for h in range(H)],
            axis=0).reshape(H * batch, seq, D)

    qh = heads(0, 0)              # (H*B, S, D)
    kh = heads(BS, E)
    vh = heads(2 * BS, 2 * E)

    # --- batched attention over all (head, batch) pairs: 2 einsums + 1 softmax ---
    s = jnp.einsum('bqd,bkd->bqk', qh, kh,
                   preferred_element_type=jnp.float32)                    # (H*B, S, S)
    s = s - jnp.max(s, axis=-1, keepdims=True)
    p = jnp.exp(s)
    p = p / jnp.sum(p, axis=-1, keepdims=True)        # exact divide (review concern)
    ctx = jnp.einsum('bqk,bkd->bqd', p, vh,
                     preferred_element_type=jnp.float32)                  # (H*B, S, D)

    # --- undo the head-major layout: (H*B, S, D) -> (BS, E), columns ordered (h, d) ---
    ctx2 = ctx.reshape(H * BS, D)
    ctx_cat = jnp.concatenate(
        [ctx2[h * BS:(h + 1) * BS, :] for h in range(H)], axis=1)         # (BS, E)

    # --- single output projection (Wo un-fused from the head loop) ---
    attn = jnp.dot(ctx_cat, wo_ref[...],
                   preferred_element_type=jnp.float32) + vec[1, 0:E]      # + bo

    # --- residual + LayerNorm 1 (dropout == identity in eval) ---
    q_in = x[0:BS, :]                         # original Q rows
    x1 = _layernorm(q_in + attn, vec[2, 0:E], vec[3, 0:E])

    # --- FFN on all B*S rows at once: Linear(E,4E) -> ReLU -> Linear(4E,E) ---
    h1 = jnp.dot(x1, w1_ref[...], preferred_element_type=jnp.float32) + vec[4, :]
    h1 = jnp.maximum(h1, 0.0)
    ffn = jnp.dot(h1, w2_ref[...], preferred_element_type=jnp.float32) + vec[5, 0:E]

    # --- residual + LayerNorm 2 ---
    o_ref[...] = _layernorm(x1 + ffn, vec[6, 0:E], vec[7, 0:E])


def pack_params(params):
    """Fuse / pack weights host-side: (E, 3E) QKV weight + one (8, 4E) vector slab."""
    E = HIDDEN
    scale = 1.0 / math.sqrt(HEAD_DIM)
    wqkv = jnp.concatenate(
        [params["wq"] * scale, params["wk"], params["wv"]], axis=1)        # (E, 3E)
    vec = jnp.zeros((8, 4 * E), jnp.float32)
    vec = vec.at[0, 0:3 * E].set(
        jnp.concatenate([params["bq"][0] * scale, params["bk"][0], params["bv"][0]]))
    vec = vec.at[1, 0:E].set(params["bo"][0])
    vec = vec.at[2, 0:E].set(params["g1"][0])
    vec = vec.at[3, 0:E].set(params["be1"][0])
    vec = vec.at[4, :].set(params["b1"][0])
    vec = vec.at[5, 0:E].set(params["b2"][0])
    vec = vec.at[6, 0:E].set(params["g2"][0])
    vec = vec.at[7, 0:E].set(params["be2"][0])
    return wqkv, params["wo"], params["w1"], params["w2"], vec


@jax.jit
def transformer_block(Q, K, V, params):
    B, S, E = Q.shape
    BS = B * S
    wqkv, wo, w1, w2, vec = pack_params(params)
    # Stack Q/K/V rows so the fused (E, 3E) projection is one matmul.
    x = jnp.concatenate(
        [Q.reshape(BS, E), K.reshape(BS, E), V.reshape(BS, E)], axis=0)    # (3BS, E)

    kernel = functools.partial(transformer_block_kernel, batch=B, seq=S)
    # Single invocation (no grid): everything fits VMEM; whole arrays are the blocks.
    # No VMEM scratch needed anymore (attention output stays in registers).
    out = pl.pallas_call(
        kernel,
        out_shape=jax.ShapeDtypeStruct((BS, E), jnp.float32),
    )(x, wqkv, wo, w1, w2, vec)
    return out.reshape(B, S, E)


def init_params(key, hidden):
    ks = jax.random.split(key, 8)
    s = 0.02
    # Stored as (in, out) so the kernel computes x @ W + b.
    return {
        "wq": s * jax.random.normal(ks[0], (hidden, hidden), jnp.float32),
        "bq": jnp.zeros((1, hidden), jnp.float32),
        "wk": s * jax.random.normal(ks[1], (hidden, hidden), jnp.float32),
        "bk": jnp.zeros((1, hidden), jnp.float32),
        "wv": s * jax.random.normal(ks[2], (hidden, hidden), jnp.float32),
        "bv": jnp.zeros((1, hidden), jnp.float32),
        "wo": s * jax.random.normal(ks[3], (hidden, hidden), jnp.float32),
        "bo": jnp.zeros((1, hidden), jnp.float32),
        "g1": jnp.ones((1, hidden), jnp.float32),
        "be1": jnp.zeros((1, hidden), jnp.float32),
        "w1": s * jax.random.normal(ks[4], (hidden, 4 * hidden), jnp.float32),
        "b1": s * jax.random.normal(ks[5], (1, 4 * hidden), jnp.float32),
        "w2": s * jax.random.normal(ks[6], (4 * hidden, hidden), jnp.float32),
        "b2": s * jax.random.normal(ks[7], (1, hidden), jnp.float32),
        "g2": jnp.ones((1, hidden), jnp.float32),
        "be2": jnp.zeros((1, hidden), jnp.float32),
    }


def reference_forward(Q, K, V, p):
    """Pure-JAX reference mirroring PyTorch TransformerBlock.forward (eval)."""
    B, S, E = Q.shape
    q = Q @ p["wq"] + p["bq"]
    k = K @ p["wk"] + p["bk"]
    v = V @ p["wv"] + p["bv"]
    qh = q.reshape(B, S, NUM_HEADS, HEAD_DIM).transpose(0, 2, 1, 3)
    kh = k.reshape(B, S, NUM_HEADS, HEAD_DIM).transpose(0, 2, 1, 3)
    vh = v.reshape(B, S, NUM_HEADS, HEAD_DIM).transpose(0, 2, 1, 3)
    s = jnp.einsum("bhqd,bhkd->bhqk", qh, kh) / jnp.sqrt(jnp.float32(HEAD_DIM))
    pmat = jax.nn.softmax(s, axis=-1)
    attn = jnp.einsum("bhqk,bhkd->bhqd", pmat, vh).transpose(0, 2, 1, 3).reshape(B, S, E)
    attn_out = attn @ p["wo"] + p["bo"]

    def ln(x, g, b):
        mu = jnp.mean(x, axis=-1, keepdims=True)
        var = jnp.mean((x - mu) ** 2, axis=-1, keepdims=True)
        return (x - mu) / jnp.sqrt(var + LN_EPS) * g + b

    x = ln(Q + attn_out, p["g1"], p["be1"])
    ffn = jnp.maximum(x @ p["w1"] + p["b1"], 0.0) @ p["w2"] + p["b2"]
    return ln(x + ffn, p["g2"], p["be2"])


if __name__ == "__main__":
    # TODO(synk): dropout is modeled as identity (inference mode); training-mode
    # stochastic dropout masks are not implemented.
    B, S, E = 2, 8, HIDDEN
    key = jax.random.PRNGKey(0)
    kq, kk, kv, kp = jax.random.split(key, 4)
    Q = jax.random.normal(kq, (B, S, E), jnp.float32)
    K = jax.random.normal(kk, (B, S, E), jnp.float32)
    V = jax.random.normal(kv, (B, S, E), jnp.float32)
    params = init_params(kp, E)

    out = transformer_block(Q, K, V, params)
    out = jax.block_until_ready(out)

    ref = reference_forward(Q, K, V, params)
    # Tolerance tightened vs. the previous version: the softmax denominator now uses an
    # exact divide instead of the approximate EUP reciprocal.
    np.testing.assert_allclose(np.asarray(out), np.asarray(ref), rtol=1e-3, atol=1e-3)

    print("KERNEL_OK")
</pallas_src>

<mosaic_0001>
module attributes {stable_mosaic.version = 11 : i64} {
  func.func @transformer_block_kernel(%arg0: memref<48x32xf32, #tpu.memory_space<vmem>>, %arg1: memref<32x96xf32, #tpu.memory_space<vmem>>, %arg2: memref<32x32xf32, #tpu.memory_space<vmem>>, %arg3: memref<32x128xf32, #tpu.memory_space<vmem>>, %arg4: memref<128x32xf32, #tpu.memory_space<vmem>>, %arg5: memref<8x128xf32, #tpu.memory_space<vmem>>, %arg6: memref<16x32xf32, #tpu.memory_space<vmem>>) attributes {dimension_semantics = [], scalar_prefetch = 0 : i64, scratch_operands = 0 : i64, tpu.core_type = #tpu.core_type<tc>} {
    %c0 = arith.constant 0 : index
    %c0_0 = arith.constant 0 : index
    %0 = vector.load %arg5[%c0, %c0_0] : memref<8x128xf32, #tpu.memory_space<vmem>>, vector<8x128xf32>
    %c0_1 = arith.constant 0 : index
    %c0_2 = arith.constant 0 : index
    %1 = vector.load %arg0[%c0_1, %c0_2] : memref<48x32xf32, #tpu.memory_space<vmem>>, vector<48x32xf32>
    %c0_3 = arith.constant 0 : index
    %c0_4 = arith.constant 0 : index
    %2 = vector.load %arg1[%c0_3, %c0_4] : memref<32x96xf32, #tpu.memory_space<vmem>>, vector<32x96xf32>
    %cst = arith.constant dense<0.000000e+00> : vector<48x96xf32>
    %3 = tpu.matmul %1, %2, %cst {dimension_numbers = #tpu.dot_dimension_numbers<[1], [0], [0], [1], [0, 0, 1, 1], [], []>} : vector<48x32xf32>, vector<32x96xf32>, vector<48x96xf32> -> vector<48x96xf32>
    %4 = vector.extract_strided_slice %0 {offsets = [0, 0], sizes = [1, 96], strides = [1, 1]} : vector<8x128xf32> to vector<1x96xf32>
    %5 = vector.shape_cast %4 : vector<1x96xf32> to vector<96xf32>
    %6 = vector.shape_cast %5 : vector<96xf32> to vector<1x96xf32>
    %7 = vector.broadcast %6 : vector<1x96xf32> to vector<48x96xf32>
    %8 = arith.addf %3, %7 : vector<48x96xf32>
    %9 = vector.extract_strided_slice %8 {offsets = [0, 0], sizes = [16, 8], strides = [1, 1]} : vector<48x96xf32> to vector<16x8xf32>
    %10 = vector.extract_strided_slice %8 {offsets = [0, 8], sizes = [16, 8], strides = [1, 1]} : vector<48x96xf32> to vector<16x8xf32>
    %11 = vector.extract_strided_slice %8 {offsets = [0, 16], sizes = [16, 8], strides = [1, 1]} : vector<48x96xf32> to vector<16x8xf32>
    %12 = vector.extract_strided_slice %8 {offsets = [0, 24], sizes = [16, 8], strides = [1, 1]} : vector<48x96xf32> to vector<16x8xf32>
    %13 = tpu.concatenate %9, %10, %11, %12 in 0 : vector<16x8xf32>, vector<16x8xf32>, vector<16x8xf32>, vector<16x8xf32> -> vector<64x8xf32>
    %14 = vector.shape_cast %13 : vector<64x8xf32> to vector<8x8x8xf32>
    %15 = vector.extract_strided_slice %8 {offsets = [16, 32], sizes = [16, 8], strides = [1, 1]} : vector<48x96xf32> to vector<16x8xf32>
    %16 = vector.extract_strided_slice %8 {offsets = [16, 40], sizes = [16, 8], strides = [1, 1]} : vector<48x96xf32> to vector<16x8xf32>
    %17 = vector.extract_strided_slice %8 {offsets = [16, 48], sizes = [16, 8], strides = [1, 1]} : vector<48x96xf32> to vector<16x8xf32>
    %18 = vector.extract_strided_slice %8 {offsets = [16, 56], sizes = [16, 8], strides = [1, 1]} : vector<48x96xf32> to vector<16x8xf32>
    %19 = tpu.concatenate %15, %16, %17, %18 in 0 : vector<16x8xf32>, vector<16x8xf32>, vector<16x8xf32>, vector<16x8xf32> -> vector<64x8xf32>
    %20 = vector.shape_cast %19 : vector<64x8xf32> to vector<8x8x8xf32>
    %21 = vector.extract_strided_slice %8 {offsets = [32, 64], sizes = [16, 8], strides = [1, 1]} : vector<48x96xf32> to vector<16x8xf32>
    %22 = vector.extract_strided_slice %8 {offsets = [32, 72], sizes = [16, 8], strides = [1, 1]} : vector<48x96xf32> to vector<16x8xf32>
    %23 = vector.extract_strided_slice %8 {offsets = [32, 80], sizes = [16, 8], strides = [1, 1]} : vector<48x96xf32> to vector<16x8xf32>
    %24 = vector.extract_strided_slice %8 {offsets = [32, 88], sizes = [16, 8], strides = [1, 1]} : vector<48x96xf32> to vector<16x8xf32>
    %25 = tpu.concatenate %21, %22, %23, %24 in 0 : vector<16x8xf32>, vector<16x8xf32>, vector<16x8xf32>, vector<16x8xf32> -> vector<64x8xf32>
    %26 = vector.shape_cast %25 : vector<64x8xf32> to vector<8x8x8xf32>
    "tpu.trace_start"() <{level = 10 : i32, message = "bqd,bkd->bqk"}> : () -> ()
    %cst_5 = arith.constant dense<0.000000e+00> : vector<8x8x8xf32>
    %27 = tpu.matmul %14, %20, %cst_5 {dimension_numbers = #tpu.dot_dimension_numbers<[2], [2], [1], [1], [0, 0, 0, 1, 1, 1], [0], [0]>} : vector<8x8x8xf32>, vector<8x8x8xf32>, vector<8x8x8xf32> -> vector<8x8x8xf32>
    "tpu.trace_stop"() : () -> ()
    %cst_6 = arith.constant dense<0xFF800000> : vector<8x8xf32>
    %28 = vector.multi_reduction <maximumf>, %27, %cst_6 [2] : vector<8x8x8xf32> to vector<8x8xf32>
    %29 = vector.shape_cast %28 : vector<8x8xf32> to vector<8x8x1xf32>
    %30 = vector.broadcast %29 : vector<8x8x1xf32> to vector<8x8x8xf32>
    %31 = arith.subf %27, %30 : vector<8x8x8xf32>
    %32 = math.exp %31 : vector<8x8x8xf32>
    %cst_7 = arith.constant dense<0.000000e+00> : vector<8x8xf32>
    %33 = vector.multi_reduction <add>, %32, %cst_7 [2] : vector<8x8x8xf32> to vector<8x8xf32>
    %34 = vector.shape_cast %33 : vector<8x8xf32> to vector<8x8x1xf32>
    %35 = vector.broadcast %34 : vector<8x8x1xf32> to vector<8x8x8xf32>
    %36 = arith.divf %32, %35 : vector<8x8x8xf32>
    "tpu.trace_start"() <{level = 10 : i32, message = "bqk,bkd->bqd"}> : () -> ()
    %cst_8 = arith.constant dense<0.000000e+00> : vector<8x8x8xf32>
    %37 = tpu.matmul %36, %26, %cst_8 {dimension_numbers = #tpu.dot_dimension_numbers<[2], [1], [1], [2], [0, 0, 0, 1, 1, 2], [0], [0]>} : vector<8x8x8xf32>, vector<8x8x8xf32>, vector<8x8x8xf32> -> vector<8x8x8xf32>
    "tpu.trace_stop"() : () -> ()
    %38 = vector.shape_cast %37 : vector<8x8x8xf32> to vector<64x8xf32>
    %39 = vector.extract_strided_slice %38 {offsets = [0, 0], sizes = [16, 8], strides = [1, 1]} : vector<64x8xf32> to vector<16x8xf32>
    %40 = vector.extract_strided_slice %38 {offsets = [16, 0], sizes = [16, 8], strides = [1, 1]} : vector<64x8xf32> to vector<16x8xf32>
    %41 = vector.extract_strided_slice %38 {offsets = [32, 0], sizes = [16, 8], strides = [1, 1]} : vector<64x8xf32> to vector<16x8xf32>
    %42 = vector.extract_strided_slice %38 {offsets = [48, 0], sizes = [16, 8], strides = [1, 1]} : vector<64x8xf32> to vector<16x8xf32>
    %43 = tpu.concatenate %39, %40, %41, %42 in 1 : vector<16x8xf32>, vector<16x8xf32>, vector<16x8xf32>, vector<16x8xf32> -> vector<16x32xf32>
    %c0_9 = arith.constant 0 : index
    %c0_10 = arith.constant 0 : index
    %44 = vector.load %arg2[%c0_9, %c0_10] : memref<32x32xf32, #tpu.memory_space<vmem>>, vector<32x32xf32>
    %cst_11 = arith.constant dense<0.000000e+00> : vector<16x32xf32>
    %45 = tpu.matmul %43, %44, %cst_11 {dimension_numbers = #tpu.dot_dimension_numbers<[1], [0], [0], [1], [0, 0, 1, 1], [], []>} : vector<16x32xf32>, vector<32x32xf32>, vector<16x32xf32> -> vector<16x32xf32>
    %46 = vector.extract_strided_slice %0 {offsets = [1, 0], sizes = [1, 32], strides = [1, 1]} : vector<8x128xf32> to vector<1x32xf32>
    %47 = vector.shape_cast %46 : vector<1x32xf32> to vector<32xf32>
    %48 = vector.shape_cast %47 : vector<32xf32> to vector<1x32xf32>
    %49 = vector.broadcast %48 : vector<1x32xf32> to vector<16x32xf32>
    %50 = arith.addf %45, %49 : vector<16x32xf32>
    %51 = vector.extract_strided_slice %1 {offsets = [0, 0], sizes = [16, 32], strides = [1, 1]} : vector<48x32xf32> to vector<16x32xf32>
    %52 = arith.addf %51, %50 : vector<16x32xf32>
    %53 = vector.extract_strided_slice %0 {offsets = [2, 0], sizes = [1, 32], strides = [1, 1]} : vector<8x128xf32> to vector<1x32xf32>
    %54 = vector.shape_cast %53 : vector<1x32xf32> to vector<32xf32>
    %55 = vector.extract_strided_slice %0 {offsets = [3, 0], sizes = [1, 32], strides = [1, 1]} : vector<8x128xf32> to vector<1x32xf32>
    %56 = vector.shape_cast %55 : vector<1x32xf32> to vector<32xf32>
    %cst_12 = arith.constant dense<0.000000e+00> : vector<16xf32>
    %57 = vector.multi_reduction <add>, %52, %cst_12 [1] : vector<16x32xf32> to vector<16xf32>
    %58 = vector.shape_cast %57 : vector<16xf32> to vector<16x1xf32>
    %cst_13 = arith.constant 3.200000e+01 : f32
    %59 = vector.broadcast %cst_13 : f32 to vector<16x1xf32>
    %60 = arith.divf %58, %59 : vector<16x1xf32>
    %61 = vector.broadcast %60 : vector<16x1xf32> to vector<16x32xf32>
    %62 = arith.subf %52, %61 : vector<16x32xf32>
    %63 = arith.mulf %62, %62 : vector<16x32xf32>
    %cst_14 = arith.constant dense<0.000000e+00> : vector<16xf32>
    %64 = vector.multi_reduction <add>, %63, %cst_14 [1] : vector<16x32xf32> to vector<16xf32>
    %65 = vector.shape_cast %64 : vector<16xf32> to vector<16x1xf32>
    %cst_15 = arith.constant 3.200000e+01 : f32
    %66 = vector.broadcast %cst_15 : f32 to vector<16x1xf32>
    %67 = arith.divf %65, %66 : vector<16x1xf32>
    %68 = vector.broadcast %60 : vector<16x1xf32> to vector<16x32xf32>
    %69 = arith.subf %52, %68 : vector<16x32xf32>
    %cst_16 = arith.constant 9.99999974E-6 : f32
    %70 = vector.broadcast %cst_16 : f32 to vector<16x1xf32>
    %71 = arith.addf %67, %70 : vector<16x1xf32>
    %72 = math.rsqrt %71 : vector<16x1xf32>
    %73 = vector.broadcast %72 : vector<16x1xf32> to vector<16x32xf32>
    %74 = arith.mulf %69, %73 : vector<16x32xf32>
    %75 = vector.shape_cast %54 : vector<32xf32> to vector<1x32xf32>
    %76 = vector.broadcast %75 : vector<1x32xf32> to vector<16x32xf32>
    %77 = arith.mulf %74, %76 : vector<16x32xf32>
    %78 = vector.shape_cast %56 : vector<32xf32> to vector<1x32xf32>
    %79 = vector.broadcast %78 : vector<1x32xf32> to vector<16x32xf32>
    %80 = arith.addf %77, %79 : vector<16x32xf32>
    %c0_17 = arith.constant 0 : index
    %c0_18 = arith.constant 0 : index
    %81 = vector.load %arg3[%c0_17, %c0_18] : memref<32x128xf32, #tpu.memory_space<vmem>>, vector<32x128xf32>
    %cst_19 = arith.constant dense<0.000000e+00> : vector<16x128xf32>
    %82 = tpu.matmul %80, %81, %cst_19 {dimension_numbers = #tpu.dot_dimension_numbers<[1], [0], [0], [1], [0, 0, 1, 1], [], []>} : vector<16x32xf32>, vector<32x128xf32>, vector<16x128xf32> -> vector<16x128xf32>
    %83 = vector.extract_strided_slice %0 {offsets = [4, 0], sizes = [1, 128], strides = [1, 1]} : vector<8x128xf32> to vector<1x128xf32>
    %84 = vector.shape_cast %83 : vector<1x128xf32> to vector<128xf32>
    %85 = vector.shape_cast %84 : vector<128xf32> to vector<1x128xf32>
    %86 = vector.broadcast %85 : vector<1x128xf32> to vector<16x128xf32>
    %87 = arith.addf %82, %86 : vector<16x128xf32>
    %cst_20 = arith.constant 0.000000e+00 : f32
    %88 = vector.broadcast %cst_20 : f32 to vector<16x128xf32>
    %89 = arith.maximumf %87, %88 : vector<16x128xf32>
    %c0_21 = arith.constant 0 : index
    %c0_22 = arith.constant 0 : index
    %90 = vector.load %arg4[%c0_21, %c0_22] : memref<128x32xf32, #tpu.memory_space<vmem>>, vector<128x32xf32>
    %cst_23 = arith.constant dense<0.000000e+00> : vector<16x32xf32>
    %91 = tpu.matmul %89, %90, %cst_23 {dimension_numbers = #tpu.dot_dimension_numbers<[1], [0], [0], [1], [0, 0, 1, 1], [], []>} : vector<16x128xf32>, vector<128x32xf32>, vector<16x32xf32> -> vector<16x32xf32>
    %92 = vector.extract_strided_slice %0 {offsets = [5, 0], sizes = [1, 32], strides = [1, 1]} : vector<8x128xf32> to vector<1x32xf32>
    %93 = vector.shape_cast %92 : vector<1x32xf32> to vector<32xf32>
    %94 = vector.shape_cast %93 : vector<32xf32> to vector<1x32xf32>
    %95 = vector.broadcast %94 : vector<1x32xf32> to vector<16x32xf32>
    %96 = arith.addf %91, %95 : vector<16x32xf32>
    %97 = arith.addf %80, %96 : vector<16x32xf32>
    %98 = vector.extract_strided_slice %0 {offsets = [6, 0], sizes = [1, 32], strides = [1, 1]} : vector<8x128xf32> to vector<1x32xf32>
    %99 = vector.shape_cast %98 : vector<1x32xf32> to vector<32xf32>
    %100 = vector.extract_strided_slice %0 {offsets = [7, 0], sizes = [1, 32], strides = [1, 1]} : vector<8x128xf32> to vector<1x32xf32>
    %101 = vector.shape_cast %100 : vector<1x32xf32> to vector<32xf32>
    %cst_24 = arith.constant dense<0.000000e+00> : vector<16xf32>
    %102 = vector.multi_reduction <add>, %97, %cst_24 [1] : vector<16x32xf32> to vector<16xf32>
    %103 = vector.shape_cast %102 : vector<16xf32> to vector<16x1xf32>
    %cst_25 = arith.constant 3.200000e+01 : f32
    %104 = vector.broadcast %cst_25 : f32 to vector<16x1xf32>
    %105 = arith.divf %103, %104 : vector<16x1xf32>
    %106 = vector.broadcast %105 : vector<16x1xf32> to vector<16x32xf32>
    %107 = arith.subf %97, %106 : vector<16x32xf32>
    %108 = arith.mulf %107, %107 : vector<16x32xf32>
    %cst_26 = arith.constant dense<0.000000e+00> : vector<16xf32>
    %109 = vector.multi_reduction <add>, %108, %cst_26 [1] : vector<16x32xf32> to vector<16xf32>
    %110 = vector.shape_cast %109 : vector<16xf32> to vector<16x1xf32>
    %cst_27 = arith.constant 3.200000e+01 : f32
    %111 = vector.broadcast %cst_27 : f32 to vector<16x1xf32>
    %112 = arith.divf %110, %111 : vector<16x1xf32>
    %113 = vector.broadcast %105 : vector<16x1xf32> to vector<16x32xf32>
    %114 = arith.subf %97, %113 : vector<16x32xf32>
    %cst_28 = arith.constant 9.99999974E-6 : f32
    %115 = vector.broadcast %cst_28 : f32 to vector<16x1xf32>
    %116 = arith.addf %112, %115 : vector<16x1xf32>
    %117 = math.rsqrt %116 : vector<16x1xf32>
    %118 = vector.broadcast %117 : vector<16x1xf32> to vector<16x32xf32>
    %119 = arith.mulf %114, %118 : vector<16x32xf32>
    %120 = vector.shape_cast %99 : vector<32xf32> to vector<1x32xf32>
    %121 = vector.broadcast %120 : vector<1x32xf32> to vector<16x32xf32>
    %122 = arith.mulf %119, %121 : vector<16x32xf32>
    %123 = vector.shape_cast %101 : vector<32xf32> to vector<1x32xf32>
    %124 = vector.broadcast %123 : vector<1x32xf32> to vector<16x32xf32>
    %125 = arith.addf %122, %124 : vector<16x32xf32>
    %c0_29 = arith.constant 0 : index
    %c0_30 = arith.constant 0 : index
    %126 = vector.load %arg6[%c0_29, %c0_30] : memref<16x32xf32, #tpu.memory_space<vmem>>, vector<16x32xf32>
    tpu.vector_store %arg6[%c0_29, %c0_30], %125 {strides = array<i32>} : memref<16x32xf32, #tpu.memory_space<vmem>>, vector<16x32xf32>,
    return
  }
}

</mosaic_0001>

<bundles_post_ra>
// kernel: transformer_block.1
= control target key start
LH: loop header
LB: loop body
LE: loop exit
PB: predicated region body
PF: predicated region fallthrough
CT: control target
= control target key end

     0   :  { %vm39_vm0 = vcmask 261120   ;;  %s2701_s0 = inlined_call_operand.vmem [shape: f32[48,32], index: 0, kind: input, shape index: {}]   ;;  %s2702_s1 = inlined_call_operand.vmem [shape: f32[32,96], index: 1, kind: input, shape index: {}]   ;;  %s2703_s2 = inlined_call_operand.vmem [shape: f32[32,32], index: 2, kind: input, shape index: {}]   ;;  %s2704_s3 = inlined_call_operand.vmem [shape: f32[32,128], index: 3, kind: input, shape index: {}]   ;;  %s2705_s4 = inlined_call_operand.vmem [shape: f32[128,32], index: 4, kind: input, shape index: {}]   ;;  %s2706_s5 = inlined_call_operand.vmem [shape: f32[8,128], index: 5, kind: input, shape index: {}]   ;;  %s2707_s6 = inlined_call_operand.hbm [shape: f32[16,32], index: 6, kind: output, shape index: {}]  }
   0x1   :  { %v31_v0 = vld [vmem:[%s2702_s1] sm:$0xff]  ;;  %v32_v1 = vld [vmem:[%s2702_s1 + $0x8] sm:$0xff]  ;;  %v33_v2 = vld [vmem:[%s2702_s1 + $0x10] sm:$0xff] }
   0x2   :  { %v2166_v3 = vpack.c.bf16 %v32_v1, %v31_v0  ;;  %v34_v4 = vld [vmem:[%s2702_s1 + $0x18] sm:$0xff]  ;;  %v2360_v5 = vld [vmem:[%s2701_s0] sm:$0xff] }
   0x3   :  { %v2170_v6 = vpack.c.bf16 %v34_v4, %v33_v2  ;;  %2020 = vmatprep.mubr.msk.f32.mxu1 %vm39_vm0, %v2360_v5 }
   0x4   :  { %2167 = vmatprep.subr.bf16.mxu1 %v2166_v3 }
   0x5   :  { %11 = vsyncpa [#allocation3], 0  ;;  %2169 = vmatpush3.bf16.msra.mxu1 %v2166_v3  ;;  %v2367_v7 = vld [vmem:[%s2701_s0 + $0x8] sm:$0xff]  ;;  %v27_v8 = vld [vmem:[%s2701_s0 + $0x10] sm:$0xff]  ;;  %v35_v10 = vlaneseq  ;;  %v2298_v20 = vmov 0.0   ;;  %vm2301_vm1 = vmmov 0  }
   0x6   :  { %2171 = vmatprep.subr.bf16.mxu1 %v2170_v6  ;;  %v28_v9 = vld [vmem:[%s2701_s0 + $0x18] sm:$0xff]  ;;  %v2385_v14 = vld [vmem:[%s2706_s5] sm:$0xff]  ;;  %v30_v17 = vld [vmem:[%s2701_s0 + $0x28] sm:$0xff]  ;;  %2049 = vmatprep.subr.mxu0 %v2298_v20  ;;  %s2299_s5 = smov 112   ;;  %s2302_s18 = smov 104   ;;  %vm197_vm2 = vcmask 64512  }
   0x7   :  { %v2379_v11 = vshrl.u32 %v35_v10, 7  ;;  %v29_v16 = vld [vmem:[%s2701_s0 + $0x20] sm:$0xff]  ;;  %s2300_s0 = smov 120   ;;  %2051 = vmatprep.mubr.msk.f32.mxu0 %vm2301_vm1, %v2298_v20  ;;  %s2303_s19 = smov 96   ;;  %vm1526_vm3 = vcmask 130048   ;;  %vm1529_vm4 = vcmask 195584  }
   0x8   :  { %s2304_s20 = smov 64   ;;  %s2305_s29 = smov 8  }
   0x9   :  { %2173 = vmatpush3.bf16.msra.mxu1 %v2170_v6  ;;  %v37_v12 = vsub.s32 0, %v2379_v11  ;;  %s2306_s30 = smov 16  }
   0xa   :  { %2029 = vmatprep.subr.mxu1 %v2298_v20 }
   0xb   :  { %v2394_v18 = vrot.slane %v2385_v14, %v37_v12 }
   0xc   :  { %2021 = vmatmul.mubr.msk.f32.vlgmr.msra.gmra.mrb[0].mxu1 %vm39_vm0, %v2367_v7 }
   0xd   :  { %2023 = vmatprep.mubr.msk.f32.mxu1 %vm39_vm0, %v27_v8 }
  0x10   :  { %2024 = vmatmul.mubr.msk.f32.gmra.mrb[2].mxu1 %vm39_vm0, %v28_v9 }
  0x11   :  { %2026 = vmatprep.mubr.msk.f32.mxu1 %vm39_vm0, %v29_v16 }
  0x14   :  { %2027 = vmatmul.mubr.msk.f32.gmra.mrb[4].mxu1 %vm39_vm0, %v30_v17 }
  0x15   :  { %2031 = vmatprep.mubr.msk.f32.mxu1 %vm2301_vm1, %v2298_v20 }
  0xdf   :  { %v2022_v13 = vpop.f32.mrb[0].mxu1 }
  0xe0   :  { %v124_v15 = vpop.f32.mrb[1].mxu1  ;;  %v130_v25 = vadd.f32 %v2022_v13, %v2394_v18 }
  0xe1   :  { %v125_v24 = vadd.f32 %v124_v15, %v2394_v18 }
  0xe3   :  { %v2025_v19 = vpop.f32.mrb[2].mxu1 }
  0xe4   :  { %v134_v21 = vpop.f32.mrb[3].mxu1  ;;  %v140_v23 = vadd.f32 %v2025_v19, %v2394_v18 }
  0xe5   :  { %v135_v22 = vadd.f32 %v134_v21, %v2394_v18 }
  0xe7   :  { %173 = vrot.lane.b32.xlu1 %v135_v22, %s2299_s5  ;;  %169 = vrot.lane.b32.xlu0 %v135_v22, %s2300_s0  ;;  %v2438_v34 = vpop.f32.mrb[4].mxu1 }
  0xe8   :  { %v2440_v35 = vpop.f32.mrb[5].mxu1  ;;  %v150_v12 = vadd.f32 %v2438_v34, %v2394_v18 }
  0xe9   :  { %v145_v10 = vadd.f32 %v2440_v35, %v2394_v18 }
  0xeb   :  { %175 = vrot.lane.b32.xlu1 %v140_v23, %s2299_s5  ;;  %171 = vrot.lane.b32.xlu0 %v140_v23, %s2300_s0 }
  0xef   :  { %179 = vrot.lane.b32.xlu1 %v140_v23, %s2302_s18  ;;  %177 = vrot.lane.b32.xlu0 %v135_v22, %s2302_s18 }
  0xf3   :  { %272 = vrot.lane.b32.xlu1 %v140_v23, %s2303_s19  ;;  %195 = vrot.lane.b32.xlu0 %v135_v22, %s2303_s19 }
  0xf7   :  { %155 = vrot.lane.b32.xlu1 %v125_v24, %s2300_s0 }
  0xfb   :  { %157 = vrot.lane.b32.xlu1 %v130_v25, %s2300_s0 }
 0x159   :  { %v174_v26 = vpop.permute.xlu1 %173  ;;  %v170_v27 = vpop.permute.xlu0 %169 }
 0x15d   :  { %v176_v28 = vpop.permute.xlu1 %175  ;;  %v172_v29 = vpop.permute.xlu0 %171 }
 0x15e   :  { %424 = vrot.lane.b32.xlu0 %v172_v29, %s2303_s19  ;;  %576 = vrot.lane.b32.xlu1 %v176_v28, %s2303_s19 }
 0x161   :  { %v178_v30 = vpop.permute.xlu0 %177  ;;  %v180_v31 = vpop.permute.xlu1 %179 }
 0x162   :  { %348 = vrot.lane.b32.xlu0 %v170_v27, %s2303_s19  ;;  %161 = vrot.lane.b32.xlu1 %v130_v25, %s2299_s5 }
 0x165   :  { %v196_v32 = vpop.permute.xlu0 %195  ;;  %v273_v33 = vpop.permute.xlu1 %272 }
 0x166   :  { %2030 = vmatpush3.xpose.msk.msra.mxu1 %vm197_vm2, %v196_v32  ;;  %159 = vrot.lane.b32.xlu0 %v125_v24, %s2299_s5 }
 0x167   :  { %728 = vrot.lane.b32.xlu1 %v180_v31, %s2303_s19  ;;  %2034 = vmatprep.subr.mxu1 %v2298_v20 }
 0x169   :  { %2032 = vmatmul.mubr.msk.f32.vlgmr.msra.gmra.mrb[6].mxu1 %vm197_vm2, %v125_v24  ;;  %v156_v36 = vpop.permute.xlu1 %155 }
 0x16a   :  { %500 = vrot.lane.b32.xlu0 %v174_v26, %s2303_s19  ;;  %2035 = vmatpush3.xpose.msk.msra.mxu1 %vm197_vm2, %v273_v33 }
 0x16b   :  { %165 = vrot.lane.b32.xlu1 %v130_v25, %s2302_s18  ;;  %2036 = vmatprep.mubr.msk.f32.mxu1 %vm2301_vm1, %v2298_v20 }
 0x16c   :  { %2039 = vmatprep.subr.mxu1 %v2298_v20 }
 0x16d   :  { %2037 = vmatmul.mubr.msk.f32.vlgmr.msra.gmra.mrb[8].mxu1 %vm197_vm2, %v130_v25  ;;  %v158_v37 = vpop.permute.xlu1 %157 }
 0x16e   :  { %652 = vrot.lane.b32.xlu0 %v178_v30, %s2303_s19  ;;  %2041 = vmatprep.mubr.msk.f32.mxu1 %vm2301_vm1, %v2298_v20 }
 0x172   :  { %163 = vrot.lane.b32.xlu0 %v125_v24, %s2302_s18 }
 0x1d0   :  { %v425_v38 = vpop.permute.xlu0 %424  ;;  %v577_v39 = vpop.permute.xlu1 %576 }
 0x1d4   :  { %v349_v40 = vpop.permute.xlu0 %348  ;;  %v162_v41 = vpop.permute.xlu1 %161 }
 0x1d5   :  { %2040 = vmatpush3.xpose.msk.msra.mxu1 %vm197_vm2, %v349_v40 }
 0x1d6   :  { %2044 = vmatprep.subr.mxu1 %v2298_v20 }
 0x1d8   :  { %v160_v42 = vpop.permute.xlu0 %159  ;;  %2042 = vmatmul.mubr.msk.f32.vlgmr.msra.gmra.mrb[10].mxu1 %vm197_vm2, %v156_v36 }
 0x1d9   :  { %2045 = vmatpush3.xpose.msk.msra.mxu1 %vm197_vm2, %v425_v38  ;;  %2046 = vmatprep.mubr.msk.f32.mxu1 %vm2301_vm1, %v2298_v20  ;;  %v729_v44 = vpop.permute.xlu1 %728 }
 0x1da   :  { %2054 = vmatprep.subr.mxu1 %v2298_v20 }
 0x1dc   :  { %v501_v43 = vpop.permute.xlu0 %500  ;;  %2047 = vmatmul.mubr.msk.f32.vlgmr.msra.gmra.mrb[12].mxu1 %vm197_vm2, %v158_v37 }
 0x1dd   :  { %2050 = vmatpush3.xpose.msk.msra.mxu0 %vm197_vm2, %v501_v43  ;;  %2055 = vmatpush3.xpose.msk.msra.mxu1 %vm197_vm2, %v577_v39  ;;  %v166_v46 = vpop.permute.xlu1 %165 }
 0x1de   :  { %2056 = vmatprep.mubr.msk.f32.mxu1 %vm2301_vm1, %v2298_v20  ;;  %2059 = vmatprep.subr.mxu0 %v2298_v20 }
 0x1df   :  { %2064 = vmatprep.subr.mxu1 %v2298_v20 }
 0x1e0   :  { %2052 = vmatmul.mubr.msk.f32.vlgmr.msra.gmra.mrb[0].mxu0 %vm197_vm2, %v160_v42  ;;  %v653_v45 = vpop.permute.xlu0 %652  ;;  %2057 = vmatmul.mubr.msk.f32.vlgmr.msra.gmra.mrb[14].mxu1 %vm197_vm2, %v162_v41 }
 0x1e1   :  { %2060 = vmatpush3.xpose.msk.msra.mxu0 %vm197_vm2, %v653_v45  ;;  %2065 = vmatpush3.xpose.msk.msra.mxu1 %vm197_vm2, %v729_v44 }
 0x1e2   :  { %2066 = vmatprep.mubr.msk.f32.mxu1 %vm2301_vm1, %v2298_v20  ;;  %2061 = vmatprep.mubr.msk.f32.mxu0 %vm2301_vm1, %v2298_v20 }
 0x1e3   :  { %2074 = vmatprep.subr.mxu1 %v2298_v20  ;;  %2069 = vmatprep.subr.mxu0 %v2298_v20 }
 0x1e4   :  { %v164_v47 = vpop.permute.xlu0 %163  ;;  %2067 = vmatmul.mubr.msk.f32.vlgmr.msra.gmra.mrb[16].mxu1 %vm197_vm2, %v166_v46 }
 0x1e5   :  { %2062 = vmatmul.mubr.msk.f32.vlgmr.msra.gmra.mrb[2].mxu0 %vm197_vm2, %v164_v47  ;;  %2076 = vmatprep.mubr.msk.f32.mxu1 %vm2301_vm1, %v2298_v20 }
 0x1e6   :  { %2071 = vmatprep.mubr.msk.f32.mxu0 %vm2301_vm1, %v2298_v20 }
 0x23c   :  { %v2472_v48 = vpop.f32.mrb[6].mxu1 }
 0x23d   :  { %v2033_v49 = vpop.f32.mrb[7].mxu1  ;;  %v804_v50 = vsel %vm197_vm2, %v2472_v48, -inf }
 0x23e   :  { %805 = vmax.xlane.f32.xlu0 %v804_v50 }
 0x240   :  { %v2476_v51 = vpop.f32.mrb[8].mxu1 }
 0x241   :  { %v2038_v52 = vpop.f32.mrb[9].mxu1  ;;  %v807_v53 = vsel %vm197_vm2, %v2476_v51, -inf }
 0x242   :  { %808 = vmax.xlane.f32.xlu1 %v807_v53 }
 0x2ab   :  { %v2480_v54 = vpop.f32.mrb[10].mxu1 }
 0x2ac   :  { %v2043_v55 = vpop.f32.mrb[11].mxu1  ;;  %v810_v56 = vsel %vm197_vm2, %v2480_v54, -inf }
 0x2ad   :  { %811 = vmax.xlane.f32.xlu0 %v810_v56 }
 0x2af   :  { %v2484_v57 = vpop.f32.mrb[12].mxu1 }
 0x2b0   :  { %v2048_v58 = vpop.f32.mrb[13].mxu1  ;;  %v813_v59 = vsel %vm197_vm2, %v2484_v57, -inf }
 0x2b1   :  { %814 = vmax.xlane.f32.xlu0 %v813_v59 }
 0x2b3   :  { %v2488_v60 = vpop.f32.mrb[0].mxu0  ;;  %v2490_v61 = vpop.f32.mrb[14].mxu1 }
 0x2b4   :  { %v2053_v62 = vpop.f32.mrb[1].mxu0  ;;  %v2058_v63 = vpop.f32.mrb[15].mxu1  ;;  %v816_v0 = vsel %vm197_vm2, %v2488_v60, -inf  ;;  %v819_v1 = vsel %vm197_vm2, %v2490_v61, -inf }
 0x2b5   :  { %817 = vmax.xlane.f32.xlu1 %v816_v0  ;;  %820 = vmax.xlane.f32.xlu0 %v819_v1 }
 0x2b7   :  { %v2496_v2 = vpop.f32.mrb[16].mxu1 }
 0x2b8   :  { %v2498_v3 = vpop.f32.mrb[2].mxu0  ;;  %v2068_v4 = vpop.f32.mrb[17].mxu1  ;;  %v825_v6 = vsel %vm197_vm2, %v2496_v2, -inf }
 0x2b9   :  { %v2063_v8 = vpop.f32.mrb[3].mxu0  ;;  %826 = vmax.xlane.f32.xlu0 %v825_v6  ;;  %v822_v9 = vsel %vm197_vm2, %v2498_v3, -inf }
 0x2ba   :  { %823 = vmax.xlane.f32.xlu1 %v822_v9 }
 0x2cb   :  { %183 = vrot.lane.b32.xlu1 %v145_v10, %s2300_s0  ;;  %v806_v13 = vpop.xlane.xlu0 %805 }
 0x2cc   :  { %v828_v30 = vsub.f32 %v2472_v48, %v806_v13 }
 0x2ce   :  { %v836_v32 = vmul.f32 1.442695, %v828_v30 }
 0x2cf   :  { %187 = vrot.lane.b32.xlu1 %v145_v10, %s2299_s5  ;;  %185 = vrot.lane.b32.xlu0 %v150_v12, %s2300_s0  ;;  %v809_v16 = vpop.xlane.xlu1 %808 }
 0x2d0   :  { %2234 = vpow2.f32 %v836_v32  ;;  %v829_v36 = vsub.f32 %v2476_v51, %v809_v16 }
 0x2d2   :  { %v838_v39 = vmul.f32 1.442695, %v829_v36  ;;  %v1533_v36 = vld [vmem:[%s2703_s2 + $0x8] sm:$0xff] }
 0x2d3   :  { %189 = vrot.lane.b32.xlu1 %v150_v12, %s2299_s5  ;;  %191 = vrot.lane.b32.xlu0 %v145_v10, %s2302_s18 }
 0x2d7   :  { %193 = vrot.lane.b32.xlu1 %v150_v12, %s2302_s18  ;;  %968 = vrot.lane.b32.xlu0 %v150_v12, %s2304_s20 }
 0x2da   :  { %v2235_v45 = vpop.eup %2234 }
 0x2db   :  { %892 = vrot.lane.b32.xlu1 %v145_v10, %s2304_s20  ;;  %v852_v48 = vsel %vm197_vm2, %v2235_v45, 0.0 }
 0x33a   :  { %v812_v15 = vpop.xlane.xlu0 %811 }
 0x33b   :  { %v830_v33 = vsub.f32 %v2480_v54, %v812_v15 }
 0x33d   :  { %v840_v34 = vmul.f32 1.442695, %v830_v33 }
 0x33e   :  { %v815_v17 = vpop.xlane.xlu0 %814 }
 0x33f   :  { %v831_v35 = vsub.f32 %v2484_v57, %v815_v17  ;;  %2236 = vpow2.f32 %v840_v34 }
 0x341   :  { %v842_v37 = vmul.f32 1.442695, %v831_v35  ;;  %v1532_v35 = vld [vmem:[%s2703_s2] sm:$0xff] }
 0x342   :  { %v818_v18 = vpop.xlane.xlu1 %817  ;;  %v821_v19 = vpop.xlane.xlu0 %820 }
 0x343   :  { %v833_v38 = vsub.f32 %v2490_v61, %v821_v19  ;;  %v832_v40 = vsub.f32 %v2488_v60, %v818_v18  ;;  %2238 = vpow2.f32 %v842_v37 }
 0x344   :  { %2240 = vpow2.f32 %v838_v39 }
 0x345   :  { %v846_v41 = vmul.f32 1.442695, %v833_v38  ;;  %v844_v43 = vmul.f32 1.442695, %v832_v40  ;;  %v2174_v38 = vpack.c.bf16 %v1533_v36, %v1532_v35  ;;  %v1535_v40 = vld [vmem:[%s2703_s2 + $0x18] sm:$0xff] }
 0x346   :  { %v827_v21 = vpop.xlane.xlu0 %826  ;;  %v1756_v36 = vld [vmem:[%s2705_s4 + $0x18] sm:$0xff] }
 0x347   :  { %v824_v22 = vpop.xlane.xlu1 %823  ;;  %v835_v42 = vsub.f32 %v2496_v2, %v827_v21  ;;  %2242 = vpow2.f32 %v846_v41 }
 0x348   :  { %v834_v44 = vsub.f32 %v2498_v3, %v824_v22  ;;  %2244 = vpow2.f32 %v844_v43 }
 0x349   :  { %v850_v46 = vmul.f32 1.442695, %v835_v42  ;;  %v2237_v49 = vpop.eup %2236 }
 0x34a   :  { %v186_v23 = vpop.permute.xlu0 %185  ;;  %v848_v47 = vmul.f32 1.442695, %v834_v44  ;;  %v858_v50 = vsel %vm197_vm2, %v2237_v49, 0.0 }
 0x34b   :  { %v184_v24 = vpop.permute.xlu1 %183  ;;  %2246 = vpow2.f32 %v850_v46 }
 0x34c   :  { %1044 = vrot.lane.b32.xlu1 %v184_v24, %s2304_s20  ;;  %2248 = vpow2.f32 %v848_v47 }
 0x34d   :  { %v2239_v51 = vpop.eup %2238 }
 0x34e   :  { %v192_v25 = vpop.permute.xlu0 %191  ;;  %v2241_v52 = vpop.eup %2240  ;;  %v861_v53 = vsel %vm197_vm2, %v2239_v51, 0.0 }
 0x34f   :  { %v188_v26 = vpop.permute.xlu1 %187  ;;  %v855_v55 = vsel %vm197_vm2, %v2241_v52, 0.0 }
 0x350   :  { %1196 = vrot.lane.b32.xlu0 %v188_v26, %s2304_s20  ;;  %1120 = vrot.lane.b32.xlu1 %v186_v23, %s2304_s20 }
 0x351   :  { %v2533_v54 = vpop.eup %2242 }
 0x352   :  { %v969_v27 = vpop.permute.xlu0 %968  ;;  %v2245_v56 = vpop.eup %2244  ;;  %v867_v57 = vsel %vm197_vm2, %v2533_v54, 0.0 }
 0x353   :  { %v190_v28 = vpop.permute.xlu1 %189  ;;  %2075 = vmatpush3.msra.mxu1 %v969_v27  ;;  %v864_v59 = vsel %vm197_vm2, %v2245_v56, 0.0 }
 0x354   :  { %1272 = vrot.lane.b32.xlu1 %v190_v28, %s2304_s20  ;;  %2084 = vmatprep.subr.mxu1 %v2298_v20 }
 0x355   :  { %v2538_v58 = vpop.eup %2246 }
 0x356   :  { %v2249_v60 = vpop.eup %2248  ;;  %v873_v61 = vsel %vm197_vm2, %v2538_v58, 0.0 }
 0x357   :  { %v194_v29 = vpop.permute.xlu1 %193  ;;  %v870_v62 = vsel %vm197_vm2, %v2249_v60, 0.0 }
 0x35b   :  { %v893_v31 = vpop.permute.xlu1 %892 }
 0x35c   :  { %2070 = vmatpush3.msra.mxu0 %v893_v31 }
 0x35d   :  { %2079 = vmatprep.subr.mxu0 %v2298_v20 }
 0x36f   :  { %853 = vadd.xlane.f32.xlu0 %v852_v48 }
 0x373   :  { %859 = vadd.xlane.f32.xlu0 %v858_v50 }
 0x377   :  { %862 = vadd.xlane.f32.xlu0 %v861_v53 }
 0x378   :  { %856 = vadd.xlane.f32.xlu1 %v855_v55 }
 0x37b   :  { %868 = vadd.xlane.f32.xlu0 %v867_v57 }
 0x37c   :  { %865 = vadd.xlane.f32.xlu1 %v864_v59 }
 0x37f   :  { %874 = vadd.xlane.f32.xlu0 %v873_v61 }
 0x380   :  { %871 = vadd.xlane.f32.xlu1 %v870_v62 }
 0x391   :  { %1424 = vrot.lane.b32.xlu1 %v194_v29, %s2304_s20 }
 0x395   :  { %1348 = vrot.lane.b32.xlu0 %v192_v25, %s2304_s20 }
 0x3be   :  { %v1045_v63 = vpop.permute.xlu1 %1044 }
 0x3c2   :  { %v1197_v0 = vpop.permute.xlu0 %1196  ;;  %v1121_v1 = vpop.permute.xlu1 %1120 }
 0x3c6   :  { %v1273_v4 = vpop.permute.xlu1 %1272 }
 0x3fc   :  { %v854_v2 = vpop.xlane.xlu0 %853 }
 0x3fd   :  { %2250 = vrcp.f32 %v854_v2 }
 0x400   :  { %v860_v3 = vpop.xlane.xlu0 %859 }
 0x401   :  { %2252 = vrcp.f32 %v860_v3  ;;  %v1538_v3 = vsub.s32 1, %v2379_v11 }
 0x404   :  { %v863_v6 = vpop.xlane.xlu0 %862 }
 0x405   :  { %v857_v8 = vpop.xlane.xlu1 %856 }
 0x406   :  { %2254 = vrcp.f32 %v857_v8 }
 0x407   :  { %v2251_v9 = vpop.eup %2250  ;;  %2256 = vrcp.f32 %v863_v6 }
 0x408   :  { %v877_v10 = vmul.f32 %v2251_v9, %v2235_v45  ;;  %v869_v12 = vpop.xlane.xlu0 %868 }
 0x409   :  { %v866_v13 = vpop.xlane.xlu1 %865 }
 0x40a   :  { %2258 = vrcp.f32 %v866_v13  ;;  %2072 = vmatmul.mubr.msk.f32.vlgmr.msra.gmra.mrb[4].mxu0 %vm197_vm2, %v877_v10 }
 0x40b   :  { %v2253_v15 = vpop.eup %2252  ;;  %2080 = vmatpush3.msra.mxu0 %v1045_v63  ;;  %2081 = vmatprep.mubr.msk.f32.mxu0 %vm2301_vm1, %v2298_v20  ;;  %2260 = vrcp.f32 %v869_v12 }
 0x40c   :  { %v881_v16 = vmul.f32 %v2253_v15, %v2237_v49  ;;  %2089 = vmatprep.subr.mxu0 %v2298_v20  ;;  %v875_v17 = vpop.xlane.xlu0 %874 }
 0x40d   :  { %v872_v18 = vpop.xlane.xlu1 %871 }
 0x40e   :  { %2262 = vrcp.f32 %v872_v18  ;;  %2082 = vmatmul.mubr.msk.f32.vlgmr.msra.gmra.mrb[6].mxu0 %vm197_vm2, %v881_v16 }
 0x40f   :  { %2090 = vmatpush3.msra.mxu0 %v1197_v0  ;;  %2091 = vmatprep.mubr.msk.f32.mxu0 %vm2301_vm1, %v2298_v20  ;;  %2264 = vrcp.f32 %v875_v17 }
 0x410   :  { %v2255_v19 = vpop.eup %2254  ;;  %2099 = vmatprep.subr.mxu0 %v2298_v20  ;;  %v1349_v27 = vpop.permute.xlu0 %1348 }
 0x411   :  { %v879_v21 = vmul.f32 %v2255_v19, %v2241_v52  ;;  %v2257_v22 = vpop.eup %2256  ;;  %v1425_v32 = vpop.permute.xlu1 %1424 }
 0x412   :  { %v883_v24 = vmul.f32 %v2257_v22, %v2239_v51 }
 0x413   :  { %2077 = vmatmul.mubr.msk.f32.vlgmr.msra.gmra.mrb[18].mxu1 %vm197_vm2, %v879_v21 }
 0x414   :  { %v2259_v23 = vpop.eup %2258  ;;  %2085 = vmatpush3.msra.mxu1 %v1121_v1  ;;  %2086 = vmatprep.mubr.msk.f32.mxu1 %vm2301_vm1, %v2298_v20 }
 0x415   :  { %v885_v25 = vmul.f32 %v2259_v23, %v2245_v56  ;;  %2094 = vmatprep.subr.mxu1 %v2298_v20  ;;  %v2261_v26 = vpop.eup %2260 }
 0x416   :  { %v887_v29 = vmul.f32 %v2261_v26, %v2533_v54  ;;  %v1662_v26 = vld [vmem:[%s2704_s3] sm:$0xff] }
 0x417   :  { %2087 = vmatmul.mubr.msk.f32.vlgmr.msra.gmra.mrb[20].mxu1 %vm197_vm2, %v883_v24  ;;  %2092 = vmatmul.mubr.msk.f32.vlgmr.msra.gmra.mrb[8].mxu0 %vm197_vm2, %v885_v25 }
 0x418   :  { %v2263_v28 = vpop.eup %2262  ;;  %2095 = vmatpush3.msra.mxu1 %v1273_v4  ;;  %2100 = vmatpush3.msra.mxu0 %v1349_v27  ;;  %v1539_v4 = vrot.slane %v2385_v14, %v1538_v3  ;;  %v1663_v27 = vld [vmem:[%s2704_s3 + $0x8] sm:$0xff] }
 0x419   :  { %v889_v30 = vmul.f32 %v2263_v28, %v2249_v60  ;;  %2096 = vmatprep.mubr.msk.f32.mxu1 %vm2301_vm1, %v2298_v20  ;;  %2101 = vmatprep.mubr.msk.f32.mxu0 %vm2301_vm1, %v2298_v20  ;;  %v2265_v31 = vpop.eup %2264  ;;  %v2182_v28 = vpack.c.bf16 %v1663_v27, %v1662_v26 }
 0x41a   :  { %2104 = vmatprep.subr.mxu1 %v2298_v20  ;;  %v891_v33 = vmul.f32 %v2265_v31, %v2538_v58  ;;  %2175 = vmatprep.subr.bf16.mxu0 %v2174_v38 }
 0x41b   :  { %2097 = vmatmul.mubr.msk.f32.vlgmr.msra.gmra.mrb[22].mxu1 %vm197_vm2, %v887_v29  ;;  %2102 = vmatmul.mubr.msk.f32.vlgmr.msra.gmra.mrb[10].mxu0 %vm197_vm2, %v889_v30  ;;  %v1664_v29 = vld [vmem:[%s2704_s3 + $0x10] sm:$0xff]  ;;  %v1665_v30 = vld [vmem:[%s2704_s3 + $0x18] sm:$0xff] }
 0x41c   :  { %2105 = vmatpush3.msra.mxu1 %v1425_v32  ;;  %2106 = vmatprep.mubr.msk.f32.mxu1 %vm2301_vm1, %v2298_v20  ;;  %v1534_v20 = vld [vmem:[%s2703_s2 + $0x10] sm:$0xff]  ;;  %s2307_s2 = smov 24   ;;  %v2186_v31 = vpack.c.bf16 %v1665_v30, %v1664_v29  ;;  %v1753_v32 = vld [vmem:[%s2705_s4] sm:$0xff] }
 0x41d   :  { %2177 = vmatpush3.bf16.msra.mxu0 %v2174_v38  ;;  %v2178_v42 = vpack.c.bf16 %v1535_v40, %v1534_v20  ;;  %2183 = vmatprep.subr.bf16.mxu1 %v2182_v28  ;;  %v1757_v38 = vld [vmem:[%s2705_s4 + $0x20] sm:$0xff]  ;;  %v1759_v40 = vld [vmem:[%s2705_s4 + $0x30] sm:$0xff] }
 0x41f   :  { %2107 = vmatmul.mubr.msk.f32.vlgmr.msra.gmra.mrb[24].mxu1 %vm197_vm2, %v891_v33  ;;  %2179 = vmatprep.subr.bf16.mxu0 %v2178_v42  ;;  %v1754_v33 = vld [vmem:[%s2705_s4 + $0x8] sm:$0xff] }
 0x420   :  { %2185 = vmatpush3.bf16.msra.mxu1 %v2182_v28  ;;  %v2190_v35 = vpack.c.bf16 %v1754_v33, %v1753_v32 }
 0x421   :  { %2181 = vmatpush3.bf16.msra.mxu0 %v2178_v42  ;;  %2187 = vmatprep.subr.bf16.mxu1 %v2186_v31 }
 0x422   :  { %2191 = vmatprep.subr.bf16.mxu0 %v2190_v35 }
 0x424   :  { %2189 = vmatpush3.bf16.msra.mxu1 %v2186_v31 }
 0x4dd   :  { %v964_v34 = vpop.f32.mrb[4].mxu0 }
 0x4de   :  { %v2073_v37 = vpop.f32.mrb[5].mxu0 }
 0x4e1   :  { %v1116_v39 = vpop.f32.mrb[6].mxu0 }
 0x4e2   :  { %1502 = vrot.lane.b32.xlu0 %v1116_v39, %s2305_s29  ;;  %v2083_v41 = vpop.f32.mrb[7].mxu0  ;;  %v1758_v39 = vld [vmem:[%s2705_s4 + $0x28] sm:$0xff] }
 0x4e3   :  { %v2198_v20 = vpack.c.bf16 %v1758_v39, %v1757_v38  ;;  %v1760_v41 = vld [vmem:[%s2705_s4 + $0x38] sm:$0xff] }
 0x4e4   :  { %v2202_v42 = vpack.c.bf16 %v1760_v41, %v1759_v40 }
 0x4e6   :  { %v1040_v43 = vpop.f32.mrb[18].mxu1 }
 0x4e7   :  { %v2078_v44 = vpop.f32.mrb[19].mxu1 }
 0x4e8   :  { %v1762_v44 = vld [vmem:[%s2705_s4 + $0x48] sm:$0xff] }
 0x4ea   :  { %v1192_v45 = vpop.f32.mrb[20].mxu1  ;;  %v1268_v46 = vpop.f32.mrb[8].mxu0 }
 0x4eb   :  { %1510 = vrot.lane.b32.xlu0 %v1268_v46, %s2306_s30  ;;  %v2093_v47 = vpop.f32.mrb[9].mxu0  ;;  %1504 = vrot.lane.b32.xlu1 %v1192_v45, %s2305_s29  ;;  %v2088_v48 = vpop.f32.mrb[21].mxu1  ;;  %v1763_v46 = vld [vmem:[%s2705_s4 + $0x50] sm:$0xff] }
 0x4ec   :  { %v1764_v47 = vld [vmem:[%s2705_s4 + $0x58] sm:$0xff] }
 0x4ed   :  { %v2210_v48 = vpack.c.bf16 %v1764_v47, %v1763_v46  ;;  %v1884_v46 = vsub.s32 7, %v2379_v11 }
 0x4ee   :  { %v1344_v49 = vpop.f32.mrb[22].mxu1  ;;  %v1420_v50 = vpop.f32.mrb[10].mxu0 }
 0x4ef   :  { %1518 = vrot.lane.b32.xlu0 %v1420_v50, %s2307_s2  ;;  %v2103_v51 = vpop.f32.mrb[11].mxu0  ;;  %1512 = vrot.lane.b32.xlu1 %v1344_v49, %s2306_s30  ;;  %v2098_v52 = vpop.f32.mrb[23].mxu1  ;;  %v1765_v49 = vld [vmem:[%s2705_s4 + $0x60] sm:$0xff]  ;;  %v1766_v50 = vld [vmem:[%s2705_s4 + $0x68] sm:$0xff] }
 0x4f0   :  { %v2214_v51 = vpack.c.bf16 %v1766_v50, %v1765_v49 }
 0x4f2   :  { %v1496_v53 = vpop.f32.mrb[24].mxu1 }
 0x4f3   :  { %1520 = vrot.lane.b32.xlu1 %v1496_v53, %s2307_s2  ;;  %v2108_v54 = vpop.f32.mrb[25].mxu1 }
 0x554   :  { %v1503_v55 = vpop.permute.xlu0 %1502 }
 0x555   :  { %v1524_v58 = vsel %vm197_vm2, %v964_v34, %v1503_v55  ;;  %v1755_v34 = vld [vmem:[%s2705_s4 + $0x10] sm:$0xff] }
 0x556   :  { %v2194_v37 = vpack.c.bf16 %v1756_v36, %v1755_v34 }
 0x55d   :  { %v1511_v56 = vpop.permute.xlu0 %1510  ;;  %v1505_v57 = vpop.permute.xlu1 %1504 }
 0x55e   :  { %v1527_v59 = vsel %vm1526_vm3, %v1524_v58, %v1511_v56  ;;  %v1525_v63 = vsel %vm197_vm2, %v1040_v43, %v1505_v57  ;;  %v1761_v43 = vld [vmem:[%s2705_s4 + $0x40] sm:$0xff]  ;;  %v1652_v58 = vsub.s32 2, %v2379_v11 }
 0x55f   :  { %v2206_v45 = vpack.c.bf16 %v1762_v44, %v1761_v43 }
 0x561   :  { %v1519_v60 = vpop.permute.xlu0 %1518  ;;  %v1513_v61 = vpop.permute.xlu1 %1512 }
 0x562   :  { %v1530_v62 = vsel %vm1529_vm4, %v1527_v59, %v1519_v60  ;;  %v1528_v0 = vsel %vm1526_vm3, %v1525_v63, %v1513_v61  ;;  %v1658_v59 = vsub.s32 3, %v2379_v11  ;;  %v1653_v60 = vrot.slane %v2385_v14, %v1652_v58 }
 0x563   :  { %2117 = vmatprep.mubr.msk.f32.mxu0 %vm39_vm0, %v1530_v62 }
 0x564   :  { %v1659_v63 = vrot.slane %v2385_v14, %v1658_v59 }
 0x565   :  { %v1521_v1 = vpop.permute.xlu1 %1520 }
 0x566   :  { %v1531_v2 = vsel %vm1529_vm4, %v1528_v0, %v1521_v1 }
 0x567   :  { %2118 = vmatmul.mubr.msk.f32.vlgmr.msra.gmra.mrb[12].mxu0 %vm39_vm0, %v1531_v2 }
 0x568   :  { %2193 = vmatpush3.bf16.msra.mxu0 %v2190_v35 }
 0x569   :  { %2195 = vmatprep.subr.bf16.mxu0 %v2194_v37 }
 0x56c   :  { %2197 = vmatpush3.bf16.msra.mxu0 %v2194_v37 }
 0x56d   :  { %2199 = vmatprep.subr.bf16.mxu0 %v2198_v20 }
 0x570   :  { %2201 = vmatpush3.bf16.msra.mxu0 %v2198_v20 }
 0x571   :  { %2203 = vmatprep.subr.bf16.mxu0 %v2202_v42 }
 0x574   :  { %2205 = vmatpush3.bf16.msra.mxu0 %v2202_v42 }
 0x575   :  { %2207 = vmatprep.subr.bf16.mxu0 %v2206_v45 }
 0x578   :  { %2209 = vmatpush3.bf16.msra.mxu0 %v2206_v45  ;;  %v1878_v45 = vsub.s32 6, %v2379_v11 }
 0x579   :  { %2211 = vmatprep.subr.bf16.mxu0 %v2210_v48 }
 0x57a   :  { %v1879_v47 = vrot.slane %v2385_v14, %v1878_v45 }
 0x57c   :  { %2213 = vmatpush3.bf16.msra.mxu0 %v2210_v48 }
 0x57d   :  { %2215 = vmatprep.subr.bf16.mxu0 %v2214_v51 }
 0x580   :  { %2217 = vmatpush3.bf16.msra.mxu0 %v2214_v51  ;;  %v1885_v51 = vrot.slane %v2385_v14, %v1884_v46 }
 0x63a   :  { %v2119_v6 = vpop.f32.mrb[12].mxu0 }
 0x63b   :  { %v1618_v8 = vadd.f32 %v2119_v6, %v1539_v4  ;;  %v1612_v9 = vpop.f32.mrb[13].mxu0 }
 0x63c   :  { %v1613_v10 = vadd.f32 %v1612_v9, %v1539_v4  ;;  %v1768_v9 = vld [vmem:[%s2705_s4 + $0x78] sm:$0xff] }
 0x63d   :  { %v1622_v12 = vadd.f32 %v1618_v8, %v2367_v7  ;;  %v1767_v8 = vld [vmem:[%s2705_s4 + $0x70] sm:$0xff]  ;;  %s2308_s4 = smov [#allocation2]  }
 0x63e   :  { %v1621_v13 = vadd.f32 %v1613_v10, %v2360_v5  ;;  %v2218_v10 = vpack.c.bf16 %v1768_v9, %v1767_v8  ;;  %s1895_s5 = sshll.u32 %s2308_s4, 4  ;;  %s1896_s5 = int_to_ptr.vmem [resolvable:$true] %s1895_s5 }
 0x63f   :  { %v1626_v15 = vsel %vm39_vm0, %v1622_v12, 0.0  ;;  %s2274_s0 = scalar_lea.vmem %s1896_s5, 256  ;;  %p2279_p1 = scmp.lt.s32.totalorder %s1896_s5, %s1896_s5 }
 0x640   :  { %1627 = vadd.xlane.f32.xlu1 %v1626_v15  ;;  %v1623_v16 = vsel %vm39_vm0, %v1621_v13, 0.0  ;;  %2219 = vmatprep.subr.bf16.mxu0 %v2218_v10  ;;  %p2275_p0 = scmp.ne.s32.totalorder %s1896_s5, %s2274_s0  ;;  %p2280_p2 = scmp.lt.s32.totalorder %s2274_s0, %s2274_s0 }
 0x641   :  { %1624 = vadd.xlane.f32.xlu0 %v1623_v16  ;;  %2221 = vmatpush3.bf16.msra.mxu0 %v2218_v10 }
 0x642   :  { %p2281_p3 = por %p2280_p2, %p2279_p1 }
 0x644   :  { %p2282_p4 = pnand %p2281_p3, %p2275_p0 }
 0x6cd   :  { %v1628_v17 = vpop.xlane.xlu1 %1627 }
 0x6ce   :  { %v1631_v18 = vmul.f32 0.03125, %v1628_v17  ;;  %v1625_v19 = vpop.xlane.xlu0 %1624 }
 0x6cf   :  { %v1630_v21 = vmul.f32 0.03125, %v1625_v19 }
 0x6d0   :  { %v2596_v22 = vsub.f32 %v1622_v12, %v1631_v18  ;;  %v1668_v12 = vsub.s32 4, %v2379_v11 }
 0x6d1   :  { %v2598_v23 = vsub.f32 %v1621_v13, %v1630_v21 }
 0x6d2   :  { %v1635_v5 = vmul.f32 %v2596_v22, %v2596_v22  ;;  %v1669_v13 = vrot.slane %v2385_v14, %v1668_v12 }
 0x6d3   :  { %v1634_v24 = vmul.f32 %v2598_v23, %v2598_v23 }
 0x6d4   :  { %v1639_v25 = vsel %vm39_vm0, %v1635_v5, 0.0 }
 0x6d5   :  { %v1636_v7 = vsel %vm39_vm0, %v1634_v24, 0.0 }
 0x6d6   :  { %1637 = vadd.xlane.f32.xlu0 %v1636_v7 }
 0x6da   :  { %1640 = vadd.xlane.f32.xlu0 %v1639_v25 }
 0x763   :  { %v1638_v52 = vpop.xlane.xlu0 %1637 }
 0x764   :  { %v1642_v53 = vmul.f32 0.03125, %v1638_v52 }
 0x766   :  { %v1644_v54 = vadd.f32 1e-05, %v1642_v53 }
 0x767   :  { %v1641_v55 = vpop.xlane.xlu0 %1640 }
 0x768   :  { %2266 = vrsqrt.f32 %v1644_v54  ;;  %v1643_v56 = vmul.f32 0.03125, %v1641_v55 }
 0x76a   :  { %v1645_v57 = vadd.f32 1e-05, %v1643_v56 }
 0x76c   :  { %2268 = vrsqrt.f32 %v1645_v57 }
 0x772   :  { %v2267_v61 = vpop.eup %2266 }
 0x773   :  { %v1648_v62 = vmul.f32 %v2267_v61, %v2598_v23 }
 0x775   :  { %v1654_v0 = vmul.f32 %v1653_v60, %v1648_v62 }
 0x776   :  { %v2269_v1 = vpop.eup %2268 }
 0x777   :  { %v1649_v2 = vmul.f32 %v2269_v1, %v2596_v22  ;;  %v1660_v3 = vadd.f32 %v1659_v63, %v1654_v0  ;;  %v1771_v22 = vsub.s32 5, %v2379_v11 }
 0x779   :  { %v1655_v4 = vmul.f32 %v1653_v60, %v1649_v2  ;;  %2128 = vmatprep.mubr.msk.f32.mxu1 %vm39_vm0, %v1660_v3  ;;  %v1772_v23 = vrot.slane %v2385_v14, %v1771_v22 }
 0x77b   :  { %v1661_v6 = vadd.f32 %v1659_v63, %v1655_v4 }
 0x77d   :  { %2129 = vmatmul.mubr.msk.f32.vlgmr.msra.gmra.mrb[26].mxu1 %vm39_vm0, %v1661_v6 }
 0x850   :  { %v2130_v15 = vpop.f32.mrb[26].mxu1 }
 0x851   :  { %v1748_v16 = vadd.f32 %v2130_v15, %v1669_v13  ;;  %v1742_v17 = vpop.f32.mrb[27].mxu1 }
 0x852   :  { %v1743_v18 = vadd.f32 %v1742_v17, %v1669_v13 }
 0x853   :  { %v1752_v21 = vmax.f32 %v1748_v16, 0.0 }
 0x854   :  { %v1751_v19 = vmax.f32 %v1743_v18, 0.0 }
 0x856   :  { %2163 = vmatprep.mubr.f32.mxu0 %v1751_v19 }
 0x857   :  { %2164 = vmatmul.mubr.f32.vlgmr.msra.gmra.mrb[14].mxu0 %v1752_v21 }
 0x92a   :  { %v2165_v24 = vpop.f32.mrb[14].mxu0 }
 0x92b   :  { %v1845_v7 = vadd.f32 %v2165_v24, %v1772_v23  ;;  %v1839_v5 = vpop.f32.mrb[15].mxu0 }
 0x92c   :  { %v1840_v25 = vadd.f32 %v1839_v5, %v1772_v23 }
 0x92d   :  { %v1849_v26 = vadd.f32 %v1845_v7, %v1661_v6 }
 0x92e   :  { %v1848_v27 = vadd.f32 %v1840_v25, %v1660_v3 }
 0x92f   :  { %v1853_v28 = vsel %vm39_vm0, %v1849_v26, 0.0 }
 0x930   :  { %1854 = vadd.xlane.f32.xlu0 %v1853_v28  ;;  %v1850_v29 = vsel %vm39_vm0, %v1848_v27, 0.0 }
 0x931   :  { %1851 = vadd.xlane.f32.xlu1 %v1850_v29 }
 0x9bd   :  { %v1855_v30 = vpop.xlane.xlu0 %1854 }
 0x9be   :  { %v1857_v31 = vmul.f32 0.03125, %v1855_v30  ;;  %v1852_v32 = vpop.xlane.xlu1 %1851 }
 0x9bf   :  { %v1856_v33 = vmul.f32 0.03125, %v1852_v32 }
 0x9c0   :  { %v1859_v34 = vsub.f32 %v1849_v26, %v1857_v31 }
 0x9c1   :  { %v1858_v35 = vsub.f32 %v1848_v27, %v1856_v33 }
 0x9c2   :  { %v1861_v36 = vmul.f32 %v1859_v34, %v1859_v34 }
 0x9c3   :  { %v1860_v37 = vmul.f32 %v1858_v35, %v1858_v35 }
 0x9c4   :  { %v1865_v38 = vsel %vm39_vm0, %v1861_v36, 0.0 }
 0x9c5   :  { %1866 = vadd.xlane.f32.xlu0 %v1865_v38  ;;  %v1862_v39 = vsel %vm39_vm0, %v1860_v37, 0.0 }
 0x9c6   :  { %1863 = vadd.xlane.f32.xlu1 %v1862_v39 }
 0xa52   :  { %v1867_v20 = vpop.xlane.xlu0 %1866 }
 0xa53   :  { %v1869_v40 = vmul.f32 0.03125, %v1867_v20  ;;  %v1864_v41 = vpop.xlane.xlu1 %1863 }
 0xa54   :  { %v1868_v42 = vmul.f32 0.03125, %v1864_v41 }
 0xa55   :  { %v1871_v43 = vadd.f32 1e-05, %v1869_v40 }
 0xa56   :  { %v1870_v44 = vadd.f32 1e-05, %v1868_v42 }
 0xa57   :  { %2270 = vrsqrt.f32 %v1871_v43 }
 0xa58   :  { %2272 = vrsqrt.f32 %v1870_v44 }
 0xa61   :  { %v2271_v48 = vpop.eup %2270 }
 0xa62   :  { %v2273_v49 = vpop.eup %2272  ;;  %v1875_v50 = vmul.f32 %v2271_v48, %v1859_v34 }
 0xa63   :  { %v1874_v52 = vmul.f32 %v2273_v49, %v1858_v35 }
 0xa64   :  { %v1881_v53 = vmul.f32 %v1879_v47, %v1875_v50 }
 0xa65   :  { %v1880_v54 = vmul.f32 %v1879_v47, %v1874_v52 }
 0xa66   :  { %v1887_v55 = vadd.f32 %v1885_v51, %v1881_v53 }
 0xa67   :  { %v1886_v56 = vadd.f32 %v1885_v51, %v1880_v54 }
 0xa68   :  { %1889 = vst.msk [vmem:[#allocation2 + $0x8] sm:$0xff] %vm39_vm0, %v1887_v55 }
 0xa69   :  { %1888 = vst.msk [vmem:[#allocation2] sm:$0xff] %vm39_vm0, %v1886_v56 }
 0xa6a   :  { %2285 = shalt.err (!%p2282_p4)
}
 0xa6b   :  { %s2286_s3 = scalar_lea.hbm %s2707_s6, 256 }
 0xa6c   :  { %p2287_p5 = scmp.ne.s32.totalorder %s2707_s6, %s2286_s3  ;;  %p2290_p6 = scmp.lt.u32.totalorder %s2286_s3, %s2707_s6 }
 0xa6e   :  { %p2292_p7 = pnand %p2290_p6, %p2287_p5 }
 0xa70   :  { %2295 = shalt.err (!%p2292_p7)
}
 0xa71   :  { %s2309_s24 = smov 128  }
 0xa72   :  { %1901 = dma.vmem_to_hbm [thread:$0]  %s1896_s5, 256, %s2707_s6, [#allocation3], %s2309_s24, %s2309_s24, %s2305_s29  }
 0xa73   :  { %2296 = dma.done.wait [#allocation3], 256  }
 0xa74   :  { %2297 = vsyncadd [#allocation3], 4294967040 }
 0xa75   :  { %1905 = vsyncpa [#allocation3], 1 }

</bundles_post_ra>
